<compile_context>
chip_gen: v7x
topology: tpu7x:2x2x1
jax: 0.10.0
libtpu: 0.0.40
codegen_flags: <defaults>
</compile_context>

<pallas_src>
import functools

import jax
import jax.numpy as jnp
from jax.experimental import pallas as pl
from jax.experimental.pallas import tpu as pltpu


def _round_up(x, m):
    return (x + m - 1) // m * m


# ----------------------------------------------------------------------------
# Fused kernel: stand-in 1x1-conv backbone (cached per image) +
# sentence->image gather + text-hidden broadcast concat.
# ----------------------------------------------------------------------------
def _fused_kernel(c_img, c_txt, sent2img_ref, x_ref, w_ref, txt_ref, out_ref,
                  feat_ref):
    # sent2img_ref: (S,) SMEM  sentence -> image index (scalar prefetch)
    # x_ref  : (1, C_in, T_HW) raw-image tile of the image this sentence uses
    # w_ref  : (C_img, C_in)   resident 1x1-conv weight (stand-in backbone)
    # txt_ref: (S, C_txt, 1)   resident LSTM hidden states (all sentences)
    # out_ref: (1, C_img + C_txt, T_HW)
    # feat_ref: (C_img, T_HW)  VMEM scratch caching this image's conv output
    s = pl.program_id(1)
    t_hw = out_ref.shape[-1]

    img = sent2img_ref[s]
    prev_img = sent2img_ref[jnp.maximum(s - 1, 0)]
    new_image = jnp.logical_or(s == 0, img != prev_img)

    # Recompute the (stand-in) backbone feature only when the image changes;
    # for repeated sentences of the same image both the DMA (same block index)
    # and the matmul are skipped, matching the torch "compute once, copy" flow.
    @pl.when(new_image)
    def _():
        feat_ref[...] = jnp.dot(w_ref[...], x_ref[0],
                                preferred_element_type=jnp.float32)

    # Both channel-range stores start on 8-sublane (f32) boundaries because
    # c_img is asserted to be a multiple of 8.
    out_ref[0, :c_img, :] = feat_ref[...].astype(out_ref.dtype)
    out_ref[0, c_img:, :] = jnp.broadcast_to(
        txt_ref[s], (c_txt, t_hw)).astype(out_ref.dtype)


def fused_level(x_flat, w, txt_feat, sent2img, *, max_hw_tile=512,
                out_dtype=jnp.float32):
    """One FPN level of the ReferExpRCNN fusion.

    x_flat:  (B, C_in, HW)  f32 raw level input (stand-in backbone input)
    w:       (C_img, C_in)  f32 1x1-conv weight (stand-in backbone)
    txt_feat:(S, C_txt)     f32 LSTM hidden state per sentence
    sent2img:(S,)           i32 sentence -> image index, grouped by image
    returns: (S, C_img + C_txt, HW) out_dtype
    """
    B, C_in, HW = x_flat.shape
    C_img = w.shape[0]
    S, C_txt = txt_feat.shape
    C_out = C_img + C_txt
    # Sublane alignment for the two channel-range stores (f32 sublane tile = 8).
    assert C_img % 8 == 0, "C_img must be a multiple of 8 for aligned stores"

    # Lane-dense spatial tile: multiple of 128, capped so double-buffered
    # in+out blocks stay well under the per-generation scoped VMEM (v7x has
    # only 64 MiB physical VMEM; v6e/v5e can take larger max_hw_tile).
    t_hw = min(_round_up(HW, 128), max_hw_tile)
    hw_pad = _round_up(HW, t_hw)
    n_hw = hw_pad // t_hw
    if hw_pad != HW:
        x_flat = jnp.pad(x_flat, ((0, 0), (0, 0), (0, hw_pad - HW)))

    # (S, C_txt, 1): C_txt on sublanes -> cheap lane broadcast in-kernel.
    txt3 = txt_feat.reshape(S, C_txt, 1)
    kernel = functools.partial(_fused_kernel, C_img, C_txt)

    out = pl.pallas_call(
        kernel,
        out_shape=jax.ShapeDtypeStruct((S, C_out, hw_pad), out_dtype),
        grid_spec=pltpu.PrefetchScalarGridSpec(
            num_scalar_prefetch=1,
            # (hw-tile, sentence): sentence is the fastest axis, so consecutive
            # steps for sentences of the SAME image keep the same x block index
            # (Pallas elides the image DMA) and hit the cached conv result.
            grid=(n_hw, S),
            in_specs=[
                # gather the raw tile of the image this sentence refers to
                pl.BlockSpec((1, C_in, t_hw), lambda h, s, s2i: (s2i[s], 0, h)),
                # resident 1x1-conv weight (constant block index -> single DMA)
                pl.BlockSpec((C_img, C_in), lambda h, s, s2i: (0, 0)),
                # resident text hidden states (constant block index -> one DMA)
                pl.BlockSpec((S, C_txt, 1), lambda h, s, s2i: (0, 0, 0)),
            ],
            out_specs=pl.BlockSpec((1, C_out, t_hw),
                                   lambda h, s, s2i: (s, 0, h)),
            scratch_shapes=[pltpu.VMEM((C_img, t_hw), jnp.float32)],
        ),
        compiler_params=pltpu.CompilerParams(
            # hw tiles are independent -> megacore-parallel on v7x;
            # the data-dependent sentence gather stays sequential ("arbitrary")
            # to preserve DMA/compute elision across grouped sentences.
            dimension_semantics=("parallel", "arbitrary"),
            vmem_limit_bytes=32 * 1024 * 1024,  # safe on v5e/v6e/v7x
        ),
    )(sent2img, x_flat, w, txt3)

    if hw_pad != HW:
        out = out[:, :, :HW]  # drop lane padding (small levels only)
    return out


if __name__ == "__main__":
    key = jax.random.PRNGKey(0)

    B = 2                 # images in batch
    C_IN = 4              # input channels of the (synthetic) backbone
    C_IMG = 8             # image_backbone.out_channels (stand-in)
    HIDDEN = 32           # wordnet.hidden_dim (extra_features)
    SPATIAL = [(16, 16), (8, 8)]   # two FPN levels
    sents_per_image = [2, 4]       # [len(s) for s in sentences]
    S = sum(sents_per_image)

    k_img, k_txt, k_w = jax.random.split(key, 3)
    images = jax.random.normal(k_img, (B, C_IN, 16, 16), jnp.float32)
    # LSTM hidden state: (num_layers=1, S, hidden); text_features = hidden[0]
    hidden = jax.random.normal(k_txt, (1, S, HIDDEN), jnp.float32)
    text_features = hidden[0]

    # sentence -> image index, grouped by image exactly like the torch
    # image_mask / repeat loop (prerequisite for the DMA/compute-elision win).
    sent2img = jnp.asarray(
        sum(([j] * n for j, n in enumerate(sents_per_image)), []), jnp.int32)

    w_keys = jax.random.split(k_w, len(SPATIAL))
    full_features, refs = [], []
    for lvl, (h, w) in enumerate(SPATIAL):
        # downsample input to this level's resolution (glue, plain JAX)
        x = images if (h, w) == (16, 16) else images[:, :, ::16 // h, ::16 // w]
        x_flat = x.reshape(B, C_IN, h * w)
        wgt = jax.random.normal(w_keys[lvl], (C_IMG, C_IN), jnp.float32) * 0.1

        fused = fused_level(x_flat, wgt, text_features, sent2img)
        full_features.append(fused.reshape(S, C_IMG + HIDDEN, h, w))

        # pure-JAX reference reproducing the torch loop exactly
        feat_ref = jnp.einsum('oc,bcp->bop', wgt, x_flat).reshape(B, C_IMG, h, w)
        ref = jnp.zeros((S, C_IMG + HIDDEN, h, w), jnp.float32)
        ref = ref.at[:, C_IMG:, :, :].set(
            jnp.broadcast_to(text_features[:, :, None, None], (S, HIDDEN, h, w)))
        ref = ref.at[:, :C_IMG, :, :].set(feat_ref[sent2img])
        refs.append(ref)

    jax.block_until_ready(full_features)
    for got, ref in zip(full_features, refs):
        assert got.shape == ref.shape and got.dtype == jnp.float32
        assert jnp.allclose(got, ref, atol=1e-5), "fusion mismatch"
    print("KERNEL_OK")
</pallas_src>

<mosaic_0001>
module attributes {stable_mosaic.version = 11 : i64} {
  func.func @_fused_kernel(%arg0: i32, %arg1: i32, %arg2: memref<6xi32, #tpu.memory_space<smem>>, %arg3: memref<1x4x256xf32, #tpu.memory_space<vmem>>, %arg4: memref<8x4xf32, #tpu.memory_space<vmem>>, %arg5: memref<6x32x1xf32, #tpu.memory_space<vmem>>, %arg6: memref<1x40x256xf32, #tpu.memory_space<vmem>>, %arg7: memref<8x256xf32, #tpu.memory_space<vmem>>) attributes {dimension_semantics = [#tpu.dimension_semantics<parallel>, #tpu.dimension_semantics<arbitrary>], iteration_bounds = array<i64: 1, 6>, scalar_prefetch = 1 : i64, scratch_operands = 1 : i64, tpu.core_type = #tpu.core_type<tc>, window_params = [{transform_indices = @transform_0, window_bounds = array<i64: 1, 4, 256>}, {pipeline_mode = #tpu.pipeline_mode<synchronous>, transform_indices = @transform_1, window_bounds = array<i64: 8, 4>}, {pipeline_mode = #tpu.pipeline_mode<synchronous>, transform_indices = @transform_2, window_bounds = array<i64: 6, 32, 1>}, {transform_indices = @transform_3, window_bounds = array<i64: 1, 40, 256>}]} {
    %0 = arith.index_cast %arg1 : i32 to index
    %1 = memref.load %arg2[%0] : memref<6xi32, #tpu.memory_space<smem>>
    %c1_i32 = arith.constant 1 : i32
    %2 = arith.subi %arg1, %c1_i32 : i32
    %c0_i32 = arith.constant 0 : i32
    %3 = arith.maxsi %2, %c0_i32 : i32
    %4 = arith.index_cast %3 : i32 to index
    %5 = memref.load %arg2[%4] : memref<6xi32, #tpu.memory_space<smem>>
    %c0_i32_0 = arith.constant 0 : i32
    %6 = arith.cmpi eq, %arg1, %c0_i32_0 : i32
    %7 = arith.cmpi ne, %1, %5 : i32
    %8 = arith.ori %6, %7 : i1
    %9 = arith.extui %8 : i1 to i32
    %c0_i32_1 = arith.constant 0 : i32
    %10 = arith.cmpi ne, %9, %c0_i32_1 : i32
    scf.if %10 {
      %c0_10 = arith.constant 0 : index
      %c0_11 = arith.constant 0 : index
      %23 = vector.load %arg4[%c0_10, %c0_11] : memref<8x4xf32, #tpu.memory_space<vmem>>, vector<8x4xf32>
      %c0_12 = arith.constant 0 : index
      %c0_13 = arith.constant 0 : index
      %c0_14 = arith.constant 0 : index
      %24 = vector.load %arg3[%c0_12, %c0_13, %c0_14] : memref<1x4x256xf32, #tpu.memory_space<vmem>>, vector<1x4x256xf32>
      %25 = vector.shape_cast %24 : vector<1x4x256xf32> to vector<4x256xf32>
      %cst = arith.constant dense<0.000000e+00> : vector<8x256xf32>
      %26 = tpu.matmul %23, %25, %cst {dimension_numbers = #tpu.dot_dimension_numbers<[1], [0], [0], [1], [0, 0, 1, 1], [], []>} : vector<8x4xf32>, vector<4x256xf32>, vector<8x256xf32> -> vector<8x256xf32>
      %c0_15 = arith.constant 0 : index
      %c0_16 = arith.constant 0 : index
      %27 = vector.load %arg7[%c0_15, %c0_16] : memref<8x256xf32, #tpu.memory_space<vmem>>, vector<8x256xf32>
      tpu.vector_store %arg7[%c0_15, %c0_16], %26 {strides = array<i32>} : memref<8x256xf32, #tpu.memory_space<vmem>>, vector<8x256xf32>,
    } else {
    }
    %c0 = arith.constant 0 : index
    %c0_2 = arith.constant 0 : index
    %11 = vector.load %arg7[%c0, %c0_2] : memref<8x256xf32, #tpu.memory_space<vmem>>, vector<8x256xf32>
    %c0_3 = arith.constant 0 : index
    %c0_4 = arith.constant 0 : index
    %c0_5 = arith.constant 0 : index
    %12 = vector.load %arg6[%c0_3, %c0_4, %c0_5] : memref<1x40x256xf32, #tpu.memory_space<vmem>>, vector<1x8x256xf32>
    %13 = vector.shape_cast %12 : vector<1x8x256xf32> to vector<8x256xf32>
    %14 = vector.shape_cast %11 : vector<8x256xf32> to vector<1x8x256xf32>
    tpu.vector_store %arg6[%c0_3, %c0_4, %c0_5], %14 {strides = array<i32>} : memref<1x40x256xf32, #tpu.memory_space<vmem>>, vector<1x8x256xf32>,
    %15 = arith.index_cast %arg1 : i32 to index
    %c0_6 = arith.constant 0 : index
    %c0_7 = arith.constant 0 : index
    %16 = vector.load %arg5[%15, %c0_6, %c0_7] : memref<6x32x1xf32, #tpu.memory_space<vmem>>, vector<1x32x1xf32>
    %17 = vector.shape_cast %16 : vector<1x32x1xf32> to vector<32x1xf32>
    %18 = vector.shape_cast %17 : vector<32x1xf32> to vector<32x1xf32>
    %19 = vector.broadcast %18 : vector<32x1xf32> to vector<32x256xf32>
    %c0_8 = arith.constant 0 : index
    %c8 = arith.constant 8 : index
    %c0_9 = arith.constant 0 : index
    %20 = vector.load %arg6[%c0_8, %c8, %c0_9] : memref<1x40x256xf32, #tpu.memory_space<vmem>>, vector<1x32x256xf32>
    %21 = vector.shape_cast %20 : vector<1x32x256xf32> to vector<32x256xf32>
    %22 = vector.shape_cast %19 : vector<32x256xf32> to vector<1x32x256xf32>
    tpu.vector_store %arg6[%c0_8, %c8, %c0_9], %22 {strides = array<i32>} : memref<1x40x256xf32, #tpu.memory_space<vmem>>, vector<1x32x256xf32>,
    return
  }
  func.func @transform_0(%arg0: i32, %arg1: i32, %arg2: memref<6xi32, #tpu.memory_space<smem>>) -> (i32, i32, i32) {
    %0 = arith.index_cast %arg1 : i32 to index
    %1 = memref.load %arg2[%0] : memref<6xi32, #tpu.memory_space<smem>>
    %c0_i32 = arith.constant 0 : i32
    %c0_i32_0 = arith.constant 0 : i32
    return %1, %c0_i32, %arg0 : i32, i32, i32
  }
  func.func @transform_1(%arg0: i32, %arg1: i32, %arg2: memref<6xi32, #tpu.memory_space<smem>>) -> (i32, i32) {
    %c0_i32 = arith.constant 0 : i32
    %c0_i32_0 = arith.constant 0 : i32
    %c0_i32_1 = arith.constant 0 : i32
    return %c0_i32, %c0_i32_0 : i32, i32
  }
  func.func @transform_2(%arg0: i32, %arg1: i32, %arg2: memref<6xi32, #tpu.memory_space<smem>>) -> (i32, i32, i32) {
    %c0_i32 = arith.constant 0 : i32
    %c0_i32_0 = arith.constant 0 : i32
    %c0_i32_1 = arith.constant 0 : i32
    %c0_i32_2 = arith.constant 0 : i32
    return %c0_i32, %c0_i32_0, %c0_i32_1 : i32, i32, i32
  }
  func.func @transform_3(%arg0: i32, %arg1: i32, %arg2: memref<6xi32, #tpu.memory_space<smem>>) -> (i32, i32, i32) {
    %c0_i32 = arith.constant 0 : i32
    %c0_i32_0 = arith.constant 0 : i32
    return %arg1, %c0_i32, %arg0 : i32, i32, i32
  }
}

</mosaic_0001>

<bundles_post_ra>
// kernel: tpu_custom_call.1
= control target key start
LH: loop header
LB: loop body
LE: loop exit
PB: predicated region body
PF: predicated region fallthrough
CT: control target
= control target key end

     0   :  { %s796_s0 = inlined_call_operand.vmem [shape: s32[6], index: 0, kind: input, shape index: {}]   ;;  %s797_s1 = inlined_call_operand.vmem [shape: f32[2,4,256], index: 1, kind: input, shape index: {}]   ;;  %s798_s2 = inlined_call_operand.vmem [shape: f32[8,4], index: 2, kind: input, shape index: {}]   ;;  %s799_s3 = inlined_call_operand.vmem [shape: f32[6,32,1], index: 3, kind: input, shape index: {}]   ;;  %s800_s4 = inlined_call_operand.hbm [shape: f32[6,40,256], index: 4, kind: output, shape index: {}]  }
   0x1   :  { %s9_s17 = sshll.u32 %s796_s0, 4  ;;  %s10_s17 = int_to_ptr.vmem [resolvable:$true] %s9_s17 }
   0x2   :  { %s527_s18 = scalar_lea.vmem %s10_s17, 16  ;;  %p532_p1 = scmp.lt.s32.totalorder %s10_s17, %s10_s17 }
   0x3   :  { %p528_p0 = scmp.ne.s32.totalorder %s10_s17, %s527_s18  ;;  %p533_p2 = scmp.lt.s32.totalorder %s527_s18, %s527_s18 }
   0x5   :  { %p534_p3 = por %p533_p2, %p532_p1 }
   0x7   :  { %p535_p4 = pnand %p534_p3, %p528_p0 }
   0x9   :  { %538 = shalt.err (!%p535_p4)  }
   0xa   :  { %s621_s19 = smov [#allocation4]  }
   0xb   :  { %12 = dma.vmem_to_smem %s10_s17, 16, %s621_s19, [#allocation3] }
   0xc   :  { %591 = dma.done.wait [#allocation3], 16 }
   0xd   :  { %592 = vsyncadd [#allocation3], 4294967280 }
   0xe   :  { %14 = sfence }
   0xf   :  { %15 = vsyncpa [#allocation6], 0 }
  0x10   :  { %17 = vsyncpa [#allocation6 + $0x1], 0  ;;  %s655_s20 = smov 0   ;;  %s657_s21 = smov 0  }
  0x11   :  { %s659_s0 = smov 0   ;;  %s661_s22 = smov 0  }
  0x12   :  { %s663_s23 = smov 0   ;;  %s665_s24 = smov 0  }
  0x13 LB: > { %s446_s25 = sadd.s32 4294967295, %s619_s24   ;;  %s447_s26 = sadd.s32 4294967294, %s619_s24   ;;  %s619_s24 = sphi %s665_s24, %s23_s24   ;;  %s615_s23 = sphi %s663_s23, %s807_s23   ;;  %s611_s22 = sphi %s661_s22, %s806_s22   ;;  %s607_s0 = sphi %s659_s0, %s805_s0   ;;  %s603_s21 = sphi %s657_s21, %s804_s21   ;;  %s599_s20 = sphi %s655_s20, %s803_s20  }
  0x14   : > { %s32_s27 = sadd.s32 1, %s615_s23  ;;  %s116_s28 = sadd.s32 1, %s607_s0 }
  0x15   : > { %p33_p5 = scmp.ge.s32.totalorder %s32_s27, 6  ;;  %p126_p6 = scmp.ne.s32.totalorder %s607_s0, %s603_s21 }
  0x16   : > { %p127_p7 = scmp.eq.s32.totalorder %s446_s25, 5  ;;  %p132_p8 = scmp.ne.s32.totalorder %s603_s21, %s599_s20 }
  0x17   : > { %s809_s27 = smov (%p33_p5, %s32_s27), 0  ;;  %p133_p10 = scmp.eq.s32.totalorder %s447_s26, 5 }
  0x18   : > { %p695_p9 = por %p127_p7, %p126_p6  ;;  %s111_s30 = ssub.s32 %s615_s23, %s809_s27 }
  0x19   : > { %p450_p11 = scmp.ge.s32.totalorder %s619_s24, 1  ;;  %p114_p12 = scmp.eq.s32.totalorder %s111_s30, 0 }
  0x1a   : > { %p702_p13 = por %p133_p10, %p132_p8  ;;  %p172_p0 = scmp.lt.s32.totalorder %s619_s24, 7 }
  0x1b   : > { %s708_s6 = scalar_select %p114_p12, %s607_s0, %s116_s28  }
  0x1c   : > { %p173_p1 = pnand %p450_p11, %p172_p0 }
  0x1d   : > { %s198_s7 = sand.u32 (!%p173_p1), 1, %s603_s21   ;;  %s201_s8 = sld [smem:[#allocation4 + %s611_s22]] (!%p173_p1) }
  0x1e   : > { %176 = sbr.rel (%p173_p1) target bundleno = 417 (0x1a1), region = 32  ;;  %s453_s10 = sadd.s32 (!%p173_p1), 4294967295, %s611_s22 }
  0x1f   : > { %s462_s9 = smul.u32 (!%p173_p1), 80, %s198_s7  ;;  %p216_p2 = scmp.gt.s32.totalorder (!%p173_p1), %s453_s10, 0 }
  0x20   : > { %s214_s11 = sld [smem:[#allocation4 + %s611_s22]] (!%p173_p1)  ;;  %p219_p4 = scmp.eq.s32.totalorder (!%p173_p1), %s611_s22, 0 }
  0x21   : > { %s720_s17 = scalar_lea.vmem (!%p173_p1), [#allocation5], %s462_s9 }
  0x23   : > { %p203_p3 = scmp.lt.s32.totalorder (!%p173_p1), %s201_s8, 1 }
  0x25   : > { %s811_s10 = smov (!%p216_p2, %s453_s10), 0  ;;  %s813_s8 = smov (!%p203_p3, %s201_s8), 1 }
  0x26   : > { %s218_s12 = sld [smem:[#allocation4 + %s811_s10]]  ;;  %s461_s13 = sshll.u32 %s813_s8, 3 }
  0x27   : > { %s210_s16 = scalar_lea.vmem %s797_s1, %s461_s13 }
  0x2c   : > { %p220_p5 = scmp.ne.s32.totalorder %s214_s11, %s218_s12 }
  0x2e   : > { %p221_p6 = por %p220_p5, %p219_p4 }
  0x2f   : > { %v226_v0 = vld [vmem:[%s210_s16] sm:$0xff] (%p221_p6)  ;;  %vm233_vm0 = vcmask (%p221_p6), 1043456   ;;  %v622_v2 = vmov (%p221_p6), 0.0   ;;  %vm229_vm1 = vcmask (%p221_p6), 31744  }
  0x30   : > { %224 = sbr.rel (!%p221_p6) target bundleno = 266 (0x10a), region = 36  ;;  %v228_v1 = vcombine.high (%p221_p6), %v226_v0, %v226_v0  ;;  %302 = vmatprep.mubr.f32.mxu0 (%p221_p6), %v622_v2  ;;  %v225_v3 = vld [vmem:[%s798_s2] sm:$0xff] (%p221_p6) }
  0x32   : > { %454 = vmatprep.subr.msk.mxu0 (%p221_p6), %vm233_vm0, %v228_v1 }
  0x33   : > { %455 = vmatpush1.msk.msra.mxu0 (%p221_p6), %vm233_vm0, %v226_v0 }
  0x34   : > { %456 = vmatmul.mubr.msk.f32.vlgmr.msra.gmra.mrb[0].mxu0 (%p221_p6), %vm229_vm1, %v225_v3 }
 0x107   : > { %v304_v4 = vpop.f32.mrb[0].mxu0 }
 0x108   : > { %309 = vst [vmem:[#allocation2] sm:$0xff] %v304_v4  ;;  %v306_v5 = vpop.f32.mrb[1].mxu0 }
 0x109   : > { %310 = vst [vmem:[#allocation2 + $0x8] sm:$0xff] %v306_v5 }
 0x10a PF: > { %s457_s25 = sshll.u32 %s611_s22, 5  ;;  %v623_v6 = vmov 0   ;;  %s463_s8 = smul.u32 1280, %s611_s22 }
 0x10b   : > { %526 = vset.pattern.permute.xlu1 %v623_v6  ;;  %525 = vset.pattern.permute.xlu0 %v623_v6  ;;  %s316_s30 = scalar_lea.vmem %s799_s3, %s457_s25  ;;  %s365_s9 = sshll.u32 %s720_s17, 4  ;;  %s742_s9 = int_to_ptr.vmem [resolvable:$true] %s365_s9 }
 0x10c   : > { %v319_v7 = vld [vmem:[%s316_s30 + $0x10] sm:$0xff]  ;;  %v317_v8 = vld [vmem:[%s316_s30] sm:$0xff]  ;;  %v320_v9 = vld [vmem:[%s316_s30 + $0x18] sm:$0xff]  ;;  %s740_s12 = scalar_lea.hbm %s800_s4, %s463_s8  ;;  %s750_s22 = scalar_lea.sflag [#allocation6], %s198_s7 }
 0x10d   : > { %333 = vperm.xlu1 %526, %v319_v7   ;;  %323 = vperm.xlu0 %525, %v317_v8   ;;  %v318_v10 = vld [vmem:[%s316_s30 + $0x8] sm:$0xff]  ;;  %s539_s13 = scalar_lea.vmem %s742_s9, 1280  ;;  %s624_s14 = smov [#allocation5]  }
 0x10e   : > { %p540_p7 = scmp.ne.s32.totalorder %s742_s9, %s539_s13  ;;  %s543_s15 = sshll.u32 %s624_s14, 4  ;;  %s544_s15 = int_to_ptr.vmem [resolvable:$false] %s543_s15 }
 0x10f   : > { %v311_v11 = vld [vmem:[#allocation2] sm:$0xff]  ;;  %s545_s16 = scalar_lea.vmem %s544_s15, 2560  ;;  %p546_p11 = scmp.lt.s32.totalorder %s742_s9, %s544_s15 }
 0x110   : > { %v312_v12 = vld [vmem:[#allocation2 + $0x8] sm:$0xff]  ;;  %313 = vst [vmem:[%s720_s17] sm:$0xff] %v311_v11  ;;  %p541_p8 = pnand %p540_p7, %p695_p9  ;;  %p547_p12 = scmp.lt.s32.totalorder %s545_s16, %s539_s13 }
 0x111   : > { %338 = vperm.xlu1 %526, %v320_v9   ;;  %328 = vperm.xlu0 %525, %v318_v10   ;;  %314 = vst [vmem:[%s720_s17 + $0x8] sm:$0xff] %v312_v12 }
 0x112   : > { %p542_p10 = pneg %p541_p8  ;;  %p548_p0 = por %p547_p12, %p546_p11 }
 0x114   : > { %p549_p1 = pnand %p548_p0, %p542_p10 }
 0x18c   : > { %v334_v13 = vpop.permute.xlu1 %333  ;;  %v324_v14 = vpop.permute.xlu0 %323 }
 0x18d   : > { %345 = vst [vmem:[%s720_s17 + $0x30] sm:$0xff] %v334_v13  ;;  %346 = vst [vmem:[%s720_s17 + $0x38] sm:$0xff] %v334_v13 }
 0x18e   : > { %341 = vst [vmem:[%s720_s17 + $0x10] sm:$0xff] %v324_v14  ;;  %342 = vst [vmem:[%s720_s17 + $0x18] sm:$0xff] %v324_v14 }
 0x190   : > { %v339_v15 = vpop.permute.xlu1 %338  ;;  %v329_v16 = vpop.permute.xlu0 %328 }
 0x191   : > { %347 = vst [vmem:[%s720_s17 + $0x40] sm:$0xff] %v339_v15  ;;  %348 = vst [vmem:[%s720_s17 + $0x48] sm:$0xff] %v339_v15 }
 0x192   : > { %343 = vst [vmem:[%s720_s17 + $0x20] sm:$0xff] %v329_v16  ;;  %344 = vst [vmem:[%s720_s17 + $0x28] sm:$0xff] %v329_v16 }
 0x193   : > { %552 = shalt.err (!%p549_p1)
}
 0x194   : > { %s553_s7 = scalar_lea.hbm %s740_s12, 1280  ;;  %s557_s19 = scalar_lea.hbm %s800_s4, 7680 }
 0x195   : > { %p554_p2 = scmp.ne.s32.totalorder %s740_s12, %s553_s7  ;;  %p558_p5 = scmp.lt.u32.totalorder %s740_s12, %s800_s4 }
 0x196   : > { %p559_p6 = scmp.lt.u32.totalorder %s557_s19, %s553_s7  ;;  %p561_p8 = scmp.lt.u32.totalorder %s553_s7, %s740_s12 }
 0x197   : > { %p555_p3 = pnand %p554_p2, %p695_p9 }
 0x198   : > { %p560_p7 = por %p559_p6, %p558_p5 }
 0x199   : > { %p556_p4 = pneg %p555_p3 }
 0x19a   : > { %p562_p10 = por %p561_p8, %p560_p7 }
 0x19c   : > { %p563_p11 = pnand %p562_p10, %p556_p4 }
 0x19e   : > { %566 = shalt.err (!%p563_p11)
}
 0x19f   : > { %s625_s28 = smov 256   ;;  %s626_s30 = smov 16  }
 0x1a0   : > { %464 = dma.vmem_to_hbm [thread:$0]  (%p695_p9), %s742_s9, 1280, %s740_s12, %s750_s22, %s625_s28, %s625_s28, %s626_s30  }
 0x1a1 PF: > { %p470_p12 = scmp.ge.s32.totalorder %s619_s24, 2  ;;  %s380_s8 = sand.u32 1, %s599_s20  }
 0x1a2   : > { %s381_s10 = scalar_lea.sflag [#allocation6], %s380_s8 }
 0x1a3   : > { %p467_p0 = pnand %p470_p12, %p702_p13 }
 0x1a5   : > { %594 = dma.done.wait (!%p467_p0), %s381_s10, 1280  }
 0x1a6   : > { %596 = vsyncadd (!%p467_p0), %s381_s10, 4294966016  ;;  %s23_s24 = sadd.s32 1, %s619_s24   ;;  %s803_s20 = smov %s603_s21 }
 0x1a7   : > { %p20_p1 = scmp.ge.s32.totalorder %s23_s24, 8   ;;  %s804_s21 = smov %s607_s0 }
 0x1a8   : > { %s805_s0 = smov %s708_s6  ;;  %s806_s22 = smov %s615_s23 }
 0x1a9   : > { %s807_s23 = smov %s809_s27  ;;  %22 = sbr.rel (!%p20_p1) target bundleno = 19 (0x13), region = 72 }
 0x1b0   :  { %386 = vsyncpa [#allocation6], 1 }
 0x1b1   :  { %388 = vsyncpa [#allocation6 + $0x1], 1 }

</bundles_post_ra>
